<compile_context>
chip_gen: v5e
topology: v5e:2x2
jax: 0.10.0
libtpu: 0.0.40
codegen_flags: <defaults>
</compile_context>

<pallas_src>
import functools

import jax
import jax.numpy as jnp
import numpy as np
from jax.experimental import pallas as pl
from jax.experimental.pallas import tpu as pltpu

EPS = 1e-5


def _basic_block_kernel(x_ref, w1_ref, w2_ref, g1_ref, b1_ref, g2_ref, b2_ref,
                        out_ref, *, H, C):
    """Fused conv-bn-relu-conv-bn-add-relu on a lane-dense (N*H, W*C) block."""
    NH, LC = x_ref.shape                      # (N*H, W*C); W*C is the lane dim
    W = LC // C
    inv_cnt = 1.0 / float(NH * W)             # elements per channel = N*H*W

    x = x_ref[...]                            # also the residual identity

    # Halo masks, hoisted: rows are (n, h) flattened; the masks zero the H
    # halo taps AND the circular-wrap row produced by the sublane roll.
    h_idx = jax.lax.broadcasted_iota(jnp.int32, (NH, LC), 0) % H
    mask_up = (h_idx >= 1).astype(jnp.float32)        # row has a valid h-1
    mask_dn = (h_idx <= H - 2).astype(jnp.float32)    # row has a valid h+1

    def conv3x3(v, w_ref):
        # Three accumulating (NH, LC) @ (LC, LC) MXU matmuls, one per H tap.
        # The three W taps + W zero-padding live inside each banded weight.
        up = mask_up * pltpu.roll(v, shift=1, axis=0)        # row r <- v[r-1]
        dn = mask_dn * pltpu.roll(v, shift=NH - 1, axis=0)   # row r <- v[r+1]
        acc = jnp.dot(up, w_ref[0], preferred_element_type=jnp.float32)
        acc = acc + jnp.dot(v, w_ref[1], preferred_element_type=jnp.float32)
        acc = acc + jnp.dot(dn, w_ref[2], preferred_element_type=jnp.float32)
        return acc

    def fold_channels(row):
        # (1, W*C) lane sums -> per-channel sums replicated into every W
        # group, via a circular lane rotate-and-add tree (log2(W) XLU rolls).
        # Channel c lives at lanes {w*C + c}; W is a power of two so the
        # doubling shifts cover each w-offset exactly once. Lane-dense, no
        # reshape/broadcast relayout.
        acc = row
        shift = C
        while shift < LC:
            acc = acc + pltpu.roll(acc, shift=shift, axis=1)
            shift *= 2
        return acc

    def batchnorm(y, g_ref, b_ref):
        # Training-mode BN: batch statistics over (N, H, W), biased variance.
        # Two-pass (mean, then var of the centered values) for stability.
        mean = fold_channels(jnp.sum(y, axis=0, keepdims=True)) * inv_cnt
        d = y - mean
        var = fold_channels(jnp.sum(d * d, axis=0, keepdims=True)) * inv_cnt
        return d * (g_ref[...] * jax.lax.rsqrt(var + EPS)) + b_ref[...]

    # conv1 -> bn1 -> relu -> conv2 -> bn2 -> +identity -> relu
    y = jnp.maximum(batchnorm(conv3x3(x, w1_ref), g1_ref, b1_ref), 0.0)
    y = batchnorm(conv3x3(y, w2_ref), g2_ref, b2_ref)
    out_ref[...] = jnp.maximum(y + x, 0.0)    # lane-dense, unmasked store


def _banded_im2col_weights(w, W):
    """(Cout, Cin, 3, 3) -> (3, W*Cin, W*Cout) per-H-tap banded im2col weights.

    For H tap ky: row index = w_in*Cin + ci, col index = w_out*Cout + co;
    block (w_in, w_out) holds w[:, :, ky, kx].T with kx = w_in - w_out + 1
    (zero outside the band), so multiplying the lane-dense activations by
    this matrix applies all three W taps with the W zero-padding built in.
    Built with exact f32 mask-multiplies (no dot).
    """
    Cout, Cin, KH, KW = w.shape
    taps = jnp.transpose(w.astype(jnp.float32), (2, 3, 1, 0))       # (ky,kx,ci,co)
    wi = jnp.arange(W)[:, None, None]
    wo = jnp.arange(W)[None, :, None]
    kx = jnp.arange(KW)[None, None, :]
    band = (wi == wo + kx - 1).astype(jnp.float32)                  # (W, W, KW)
    band_e = band[None, :, None, :, None, :]                        # (1,W,1,W,1,KW)
    taps_e = jnp.transpose(taps, (0, 2, 3, 1))[:, None, :, None, :, :]  # (KH,1,Ci,1,Co,KW)
    full = jnp.sum(band_e * taps_e, axis=-1)                        # (KH,W,Ci,W,Co)
    return full.reshape(KH, W * Cin, W * Cout)


def prepare_block_params(params, W):
    """One-time preprocessing (hoisted out of the per-step forward): banded
    im2col conv weights + BN gamma/beta pre-tiled to the lane-dense layout."""
    C = params["bn1_gamma"].shape[0]
    tile_c = lambda p: jnp.tile(p.reshape(1, C).astype(jnp.float32), (1, W))
    return {
        "w1": _banded_im2col_weights(params["conv1_w"], W),         # (3, W*C, W*C)
        "w2": _banded_im2col_weights(params["conv2_w"], W),
        "g1": tile_c(params["bn1_gamma"]), "b1": tile_c(params["bn1_beta"]),
        "g2": tile_c(params["bn2_gamma"]), "b2": tile_c(params["bn2_beta"]),
    }


def basic_block_forward(x_nchw, prepped):
    """BasicBlock forward. x_nchw: (N, C, H, W) float32 (PyTorch layout);
    prepped: output of prepare_block_params."""
    N, C, H, W = x_nchw.shape
    assert W & (W - 1) == 0, "W must be a power of two for the lane fold tree"
    LC = W * C                                  # lane width of the packed layout

    # NCHW -> lane-dense (N*H, W*C). No halo padding (handled in-kernel); this
    # same block is the conv input AND the residual identity.
    x2d = jnp.transpose(x_nchw, (0, 2, 3, 1)).reshape(N * H, LC).astype(jnp.float32)

    vmem = pl.BlockSpec(memory_space=pltpu.MemorySpace.VMEM)
    out2d = pl.pallas_call(
        functools.partial(_basic_block_kernel, H=H, C=C),
        out_shape=jax.ShapeDtypeStruct((N * H, LC), jnp.float32),
        in_specs=[vmem] * 7,
        out_specs=vmem,
        compiler_params=pltpu.CompilerParams(vmem_limit_bytes=32 * 1024 * 1024),
    )(x2d, prepped["w1"], prepped["w2"], prepped["g1"], prepped["b1"],
      prepped["g2"], prepped["b2"])

    out = out2d.reshape(N, H, W, C)
    return jnp.transpose(out, (0, 3, 1, 2))                         # -> NCHW


def basic_block_reference(x_nchw, params):
    """Pure-JAX reference (lax conv + batch-stat BN) for verification."""
    x = jnp.transpose(x_nchw, (0, 2, 3, 1)).astype(jnp.float32)

    def conv(y, w):
        w_hwio = jnp.transpose(w, (2, 3, 1, 0))
        return jax.lax.conv_general_dilated(
            y, w_hwio, window_strides=(1, 1), padding="SAME",
            dimension_numbers=("NHWC", "HWIO", "NHWC"))

    def bn(y, g, b):
        mean = jnp.mean(y, axis=(0, 1, 2), keepdims=True)
        d = y - mean
        var = jnp.mean(d * d, axis=(0, 1, 2), keepdims=True)
        return d * jax.lax.rsqrt(var + EPS) * g + b

    g1 = params["bn1_gamma"].reshape(1, 1, 1, -1)
    b1 = params["bn1_beta"].reshape(1, 1, 1, -1)
    g2 = params["bn2_gamma"].reshape(1, 1, 1, -1)
    b2 = params["bn2_beta"].reshape(1, 1, 1, -1)

    y = jnp.maximum(bn(conv(x, params["conv1_w"]), g1, b1), 0.0)
    y = bn(conv(y, params["conv2_w"]), g2, b2) + x
    y = jnp.maximum(y, 0.0)
    return jnp.transpose(y, (0, 3, 1, 2))


if __name__ == "__main__":
    # Small shapes: batch=2, channels=8, spatial=16x16 (in_channel == out_channel).
    # W*C = 128 maps the packed row exactly onto the 128-lane vreg width.
    N, C, H, W = 2, 8, 16, 16

    key = jax.random.PRNGKey(0)
    k_x, k_w1, k_w2, k_g1, k_b1, k_g2, k_b2 = jax.random.split(key, 7)

    x = jax.random.normal(k_x, (N, C, H, W), dtype=jnp.float32)
    params = {
        "conv1_w": 0.1 * jax.random.normal(k_w1, (C, C, 3, 3), dtype=jnp.float32),
        "conv2_w": 0.1 * jax.random.normal(k_w2, (C, C, 3, 3), dtype=jnp.float32),
        "bn1_gamma": 1.0 + 0.1 * jax.random.normal(k_g1, (C,), dtype=jnp.float32),
        "bn1_beta": 0.1 * jax.random.normal(k_b1, (C,), dtype=jnp.float32),
        "bn2_gamma": 1.0 + 0.1 * jax.random.normal(k_g2, (C,), dtype=jnp.float32),
        "bn2_beta": 0.1 * jax.random.normal(k_b2, (C,), dtype=jnp.float32),
    }

    # One-time preprocessing (hoisted out of the forward pass).
    prepped = jax.block_until_ready(prepare_block_params(params, W))

    out = basic_block_forward(x, prepped)
    out = jax.block_until_ready(out)

    ref = jax.block_until_ready(basic_block_reference(x, params))
    np.testing.assert_allclose(np.asarray(out), np.asarray(ref),
                               rtol=1e-3, atol=1e-3)
    assert out.shape == (N, C, H, W)

    print("KERNEL_OK")
</pallas_src>

<mosaic_0001>
module attributes {stable_mosaic.version = 11 : i64} {
  func.func @_basic_block_kernel(%arg0: memref<32x128xf32, #tpu.memory_space<vmem>>, %arg1: memref<3x128x128xf32, #tpu.memory_space<vmem>>, %arg2: memref<3x128x128xf32, #tpu.memory_space<vmem>>, %arg3: memref<1x128xf32, #tpu.memory_space<vmem>>, %arg4: memref<1x128xf32, #tpu.memory_space<vmem>>, %arg5: memref<1x128xf32, #tpu.memory_space<vmem>>, %arg6: memref<1x128xf32, #tpu.memory_space<vmem>>, %arg7: memref<32x128xf32, #tpu.memory_space<vmem>>) attributes {dimension_semantics = [], scalar_prefetch = 0 : i64, scratch_operands = 0 : i64, tpu.core_type = #tpu.core_type<tc>} {
    %c0 = arith.constant 0 : index
    %c0_0 = arith.constant 0 : index
    %0 = vector.load %arg0[%c0, %c0_0] : memref<32x128xf32, #tpu.memory_space<vmem>>, vector<32x128xf32>
    %1 = tpu.iota {dimensions = array<i32: 0>} : vector<32x128xi32>
    %c16_i32 = arith.constant 16 : i32
    %c0_i32 = arith.constant 0 : i32
    %2 = arith.cmpi eq, %c16_i32, %c0_i32 : i32
    %c1_i32 = arith.constant 1 : i32
    %3 = arith.select %2, %c1_i32, %c16_i32 : i32
    %4 = vector.broadcast %3 : i32 to vector<32x128xi32>
    %5 = arith.remsi %1, %4 : vector<32x128xi32>
    %c0_i32_1 = arith.constant 0 : i32
    %6 = vector.broadcast %c0_i32_1 : i32 to vector<32x128xi32>
    %7 = arith.cmpi ne, %5, %6 : vector<32x128xi32>
    %c0_i32_2 = arith.constant 0 : i32
    %8 = vector.broadcast %c0_i32_2 : i32 to vector<32x128xi32>
    %9 = arith.cmpi slt, %5, %8 : vector<32x128xi32>
    %c0_i32_3 = arith.constant 0 : i32
    %10 = arith.cmpi slt, %3, %c0_i32_3 : i32
    %11 = vector.broadcast %10 : i1 to vector<32x128xi1>
    %12 = vector.broadcast %11 : vector<32x128xi1> to vector<32x128xi1>
    %13 = arith.xori %9, %12 : vector<32x128xi1>
    %14 = arith.andi %13, %7 : vector<32x128xi1>
    %15 = vector.broadcast %3 : i32 to vector<32x128xi32>
    %16 = arith.addi %5, %15 : vector<32x128xi32>
    %17 = arith.select %14, %16, %5 : vector<32x128xi1>, vector<32x128xi32>
    %c1_i32_4 = arith.constant 1 : i32
    %18 = vector.broadcast %c1_i32_4 : i32 to vector<32x128xi32>
    %19 = arith.cmpi sge, %17, %18 : vector<32x128xi32>
    %20 = arith.extui %19 : vector<32x128xi1> to vector<32x128xi32>
    %21 = arith.sitofp %20 : vector<32x128xi32> to vector<32x128xf32>
    %c14_i32 = arith.constant 14 : i32
    %22 = vector.broadcast %c14_i32 : i32 to vector<32x128xi32>
    %23 = arith.cmpi sle, %17, %22 : vector<32x128xi32>
    %24 = arith.extui %23 : vector<32x128xi1> to vector<32x128xi32>
    %25 = arith.sitofp %24 : vector<32x128xi32> to vector<32x128xf32>
    %c1_i32_5 = arith.constant 1 : i32
    %26 = tpu.dynamic_rotate %0 by %c1_i32_5 dim 0 : vector<32x128xf32>, i32 -> vector<32x128xf32>
    %27 = arith.mulf %21, %26 : vector<32x128xf32>
    %c31_i32 = arith.constant 31 : i32
    %28 = tpu.dynamic_rotate %0 by %c31_i32 dim 0 : vector<32x128xf32>, i32 -> vector<32x128xf32>
    %29 = arith.mulf %25, %28 : vector<32x128xf32>
    %c0_6 = arith.constant 0 : index
    %c0_7 = arith.constant 0 : index
    %c0_8 = arith.constant 0 : index
    %30 = vector.load %arg1[%c0_6, %c0_7, %c0_8] : memref<3x128x128xf32, #tpu.memory_space<vmem>>, vector<1x128x128xf32>
    %31 = vector.shape_cast %30 : vector<1x128x128xf32> to vector<128x128xf32>
    %cst = arith.constant dense<0.000000e+00> : vector<32x128xf32>
    %32 = tpu.matmul %27, %31, %cst {dimension_numbers = #tpu.dot_dimension_numbers<[1], [0], [0], [1], [0, 0, 1, 1], [], []>} : vector<32x128xf32>, vector<128x128xf32>, vector<32x128xf32> -> vector<32x128xf32>
    %c1 = arith.constant 1 : index
    %c0_9 = arith.constant 0 : index
    %c0_10 = arith.constant 0 : index
    %33 = vector.load %arg1[%c1, %c0_9, %c0_10] : memref<3x128x128xf32, #tpu.memory_space<vmem>>, vector<1x128x128xf32>
    %34 = vector.shape_cast %33 : vector<1x128x128xf32> to vector<128x128xf32>
    %cst_11 = arith.constant dense<0.000000e+00> : vector<32x128xf32>
    %35 = tpu.matmul %0, %34, %cst_11 {dimension_numbers = #tpu.dot_dimension_numbers<[1], [0], [0], [1], [0, 0, 1, 1], [], []>} : vector<32x128xf32>, vector<128x128xf32>, vector<32x128xf32> -> vector<32x128xf32>
    %36 = arith.addf %32, %35 : vector<32x128xf32>
    %c2 = arith.constant 2 : index
    %c0_12 = arith.constant 0 : index
    %c0_13 = arith.constant 0 : index
    %37 = vector.load %arg1[%c2, %c0_12, %c0_13] : memref<3x128x128xf32, #tpu.memory_space<vmem>>, vector<1x128x128xf32>
    %38 = vector.shape_cast %37 : vector<1x128x128xf32> to vector<128x128xf32>
    %cst_14 = arith.constant dense<0.000000e+00> : vector<32x128xf32>
    %39 = tpu.matmul %29, %38, %cst_14 {dimension_numbers = #tpu.dot_dimension_numbers<[1], [0], [0], [1], [0, 0, 1, 1], [], []>} : vector<32x128xf32>, vector<128x128xf32>, vector<32x128xf32> -> vector<32x128xf32>
    %40 = arith.addf %36, %39 : vector<32x128xf32>
    %cst_15 = arith.constant dense<0.000000e+00> : vector<128xf32>
    %41 = vector.multi_reduction <add>, %40, %cst_15 [0] : vector<32x128xf32> to vector<128xf32>
    %42 = vector.shape_cast %41 : vector<128xf32> to vector<1x128xf32>
    %c8_i32 = arith.constant 8 : i32
    %43 = tpu.dynamic_rotate %42 by %c8_i32 dim 1 : vector<1x128xf32>, i32 -> vector<1x128xf32>
    %44 = arith.addf %42, %43 : vector<1x128xf32>
    %c16_i32_16 = arith.constant 16 : i32
    %45 = tpu.dynamic_rotate %44 by %c16_i32_16 dim 1 : vector<1x128xf32>, i32 -> vector<1x128xf32>
    %46 = arith.addf %44, %45 : vector<1x128xf32>
    %c32_i32 = arith.constant 32 : i32
    %47 = tpu.dynamic_rotate %46 by %c32_i32 dim 1 : vector<1x128xf32>, i32 -> vector<1x128xf32>
    %48 = arith.addf %46, %47 : vector<1x128xf32>
    %c64_i32 = arith.constant 64 : i32
    %49 = tpu.dynamic_rotate %48 by %c64_i32 dim 1 : vector<1x128xf32>, i32 -> vector<1x128xf32>
    %50 = arith.addf %48, %49 : vector<1x128xf32>
    %cst_17 = arith.constant 0.001953125 : f32
    %51 = vector.broadcast %cst_17 : f32 to vector<1x128xf32>
    %52 = arith.mulf %50, %51 : vector<1x128xf32>
    %53 = vector.broadcast %52 : vector<1x128xf32> to vector<32x128xf32>
    %54 = arith.subf %40, %53 : vector<32x128xf32>
    %55 = arith.mulf %54, %54 : vector<32x128xf32>
    %cst_18 = arith.constant dense<0.000000e+00> : vector<128xf32>
    %56 = vector.multi_reduction <add>, %55, %cst_18 [0] : vector<32x128xf32> to vector<128xf32>
    %57 = vector.shape_cast %56 : vector<128xf32> to vector<1x128xf32>
    %c8_i32_19 = arith.constant 8 : i32
    %58 = tpu.dynamic_rotate %57 by %c8_i32_19 dim 1 : vector<1x128xf32>, i32 -> vector<1x128xf32>
    %59 = arith.addf %57, %58 : vector<1x128xf32>
    %c16_i32_20 = arith.constant 16 : i32
    %60 = tpu.dynamic_rotate %59 by %c16_i32_20 dim 1 : vector<1x128xf32>, i32 -> vector<1x128xf32>
    %61 = arith.addf %59, %60 : vector<1x128xf32>
    %c32_i32_21 = arith.constant 32 : i32
    %62 = tpu.dynamic_rotate %61 by %c32_i32_21 dim 1 : vector<1x128xf32>, i32 -> vector<1x128xf32>
    %63 = arith.addf %61, %62 : vector<1x128xf32>
    %c64_i32_22 = arith.constant 64 : i32
    %64 = tpu.dynamic_rotate %63 by %c64_i32_22 dim 1 : vector<1x128xf32>, i32 -> vector<1x128xf32>
    %65 = arith.addf %63, %64 : vector<1x128xf32>
    %cst_23 = arith.constant 0.001953125 : f32
    %66 = vector.broadcast %cst_23 : f32 to vector<1x128xf32>
    %67 = arith.mulf %65, %66 : vector<1x128xf32>
    %c0_24 = arith.constant 0 : index
    %c0_25 = arith.constant 0 : index
    %68 = vector.load %arg3[%c0_24, %c0_25] : memref<1x128xf32, #tpu.memory_space<vmem>>, vector<1x128xf32>
    %cst_26 = arith.constant 9.99999974E-6 : f32
    %69 = vector.broadcast %cst_26 : f32 to vector<1x128xf32>
    %70 = arith.addf %67, %69 : vector<1x128xf32>
    %71 = math.rsqrt %70 : vector<1x128xf32>
    %72 = arith.mulf %68, %71 : vector<1x128xf32>
    %73 = vector.broadcast %72 : vector<1x128xf32> to vector<32x128xf32>
    %74 = arith.mulf %54, %73 : vector<32x128xf32>
    %c0_27 = arith.constant 0 : index
    %c0_28 = arith.constant 0 : index
    %75 = vector.load %arg4[%c0_27, %c0_28] : memref<1x128xf32, #tpu.memory_space<vmem>>, vector<1x128xf32>
    %76 = vector.broadcast %75 : vector<1x128xf32> to vector<32x128xf32>
    %77 = arith.addf %74, %76 : vector<32x128xf32>
    %cst_29 = arith.constant 0.000000e+00 : f32
    %78 = vector.broadcast %cst_29 : f32 to vector<32x128xf32>
    %79 = arith.maximumf %77, %78 : vector<32x128xf32>
    %c1_i32_30 = arith.constant 1 : i32
    %80 = tpu.dynamic_rotate %79 by %c1_i32_30 dim 0 : vector<32x128xf32>, i32 -> vector<32x128xf32>
    %81 = arith.mulf %21, %80 : vector<32x128xf32>
    %c31_i32_31 = arith.constant 31 : i32
    %82 = tpu.dynamic_rotate %79 by %c31_i32_31 dim 0 : vector<32x128xf32>, i32 -> vector<32x128xf32>
    %83 = arith.mulf %25, %82 : vector<32x128xf32>
    %c0_32 = arith.constant 0 : index
    %c0_33 = arith.constant 0 : index
    %c0_34 = arith.constant 0 : index
    %84 = vector.load %arg2[%c0_32, %c0_33, %c0_34] : memref<3x128x128xf32, #tpu.memory_space<vmem>>, vector<1x128x128xf32>
    %85 = vector.shape_cast %84 : vector<1x128x128xf32> to vector<128x128xf32>
    %cst_35 = arith.constant dense<0.000000e+00> : vector<32x128xf32>
    %86 = tpu.matmul %81, %85, %cst_35 {dimension_numbers = #tpu.dot_dimension_numbers<[1], [0], [0], [1], [0, 0, 1, 1], [], []>} : vector<32x128xf32>, vector<128x128xf32>, vector<32x128xf32> -> vector<32x128xf32>
    %c1_36 = arith.constant 1 : index
    %c0_37 = arith.constant 0 : index
    %c0_38 = arith.constant 0 : index
    %87 = vector.load %arg2[%c1_36, %c0_37, %c0_38] : memref<3x128x128xf32, #tpu.memory_space<vmem>>, vector<1x128x128xf32>
    %88 = vector.shape_cast %87 : vector<1x128x128xf32> to vector<128x128xf32>
    %cst_39 = arith.constant dense<0.000000e+00> : vector<32x128xf32>
    %89 = tpu.matmul %79, %88, %cst_39 {dimension_numbers = #tpu.dot_dimension_numbers<[1], [0], [0], [1], [0, 0, 1, 1], [], []>} : vector<32x128xf32>, vector<128x128xf32>, vector<32x128xf32> -> vector<32x128xf32>
    %90 = arith.addf %86, %89 : vector<32x128xf32>
    %c2_40 = arith.constant 2 : index
    %c0_41 = arith.constant 0 : index
    %c0_42 = arith.constant 0 : index
    %91 = vector.load %arg2[%c2_40, %c0_41, %c0_42] : memref<3x128x128xf32, #tpu.memory_space<vmem>>, vector<1x128x128xf32>
    %92 = vector.shape_cast %91 : vector<1x128x128xf32> to vector<128x128xf32>
    %cst_43 = arith.constant dense<0.000000e+00> : vector<32x128xf32>
    %93 = tpu.matmul %83, %92, %cst_43 {dimension_numbers = #tpu.dot_dimension_numbers<[1], [0], [0], [1], [0, 0, 1, 1], [], []>} : vector<32x128xf32>, vector<128x128xf32>, vector<32x128xf32> -> vector<32x128xf32>
    %94 = arith.addf %90, %93 : vector<32x128xf32>
    %cst_44 = arith.constant dense<0.000000e+00> : vector<128xf32>
    %95 = vector.multi_reduction <add>, %94, %cst_44 [0] : vector<32x128xf32> to vector<128xf32>
    %96 = vector.shape_cast %95 : vector<128xf32> to vector<1x128xf32>
    %c8_i32_45 = arith.constant 8 : i32
    %97 = tpu.dynamic_rotate %96 by %c8_i32_45 dim 1 : vector<1x128xf32>, i32 -> vector<1x128xf32>
    %98 = arith.addf %96, %97 : vector<1x128xf32>
    %c16_i32_46 = arith.constant 16 : i32
    %99 = tpu.dynamic_rotate %98 by %c16_i32_46 dim 1 : vector<1x128xf32>, i32 -> vector<1x128xf32>
    %100 = arith.addf %98, %99 : vector<1x128xf32>
    %c32_i32_47 = arith.constant 32 : i32
    %101 = tpu.dynamic_rotate %100 by %c32_i32_47 dim 1 : vector<1x128xf32>, i32 -> vector<1x128xf32>
    %102 = arith.addf %100, %101 : vector<1x128xf32>
    %c64_i32_48 = arith.constant 64 : i32
    %103 = tpu.dynamic_rotate %102 by %c64_i32_48 dim 1 : vector<1x128xf32>, i32 -> vector<1x128xf32>
    %104 = arith.addf %102, %103 : vector<1x128xf32>
    %cst_49 = arith.constant 0.001953125 : f32
    %105 = vector.broadcast %cst_49 : f32 to vector<1x128xf32>
    %106 = arith.mulf %104, %105 : vector<1x128xf32>
    %107 = vector.broadcast %106 : vector<1x128xf32> to vector<32x128xf32>
    %108 = arith.subf %94, %107 : vector<32x128xf32>
    %109 = arith.mulf %108, %108 : vector<32x128xf32>
    %cst_50 = arith.constant dense<0.000000e+00> : vector<128xf32>
    %110 = vector.multi_reduction <add>, %109, %cst_50 [0] : vector<32x128xf32> to vector<128xf32>
    %111 = vector.shape_cast %110 : vector<128xf32> to vector<1x128xf32>
    %c8_i32_51 = arith.constant 8 : i32
    %112 = tpu.dynamic_rotate %111 by %c8_i32_51 dim 1 : vector<1x128xf32>, i32 -> vector<1x128xf32>
    %113 = arith.addf %111, %112 : vector<1x128xf32>
    %c16_i32_52 = arith.constant 16 : i32
    %114 = tpu.dynamic_rotate %113 by %c16_i32_52 dim 1 : vector<1x128xf32>, i32 -> vector<1x128xf32>
    %115 = arith.addf %113, %114 : vector<1x128xf32>
    %c32_i32_53 = arith.constant 32 : i32
    %116 = tpu.dynamic_rotate %115 by %c32_i32_53 dim 1 : vector<1x128xf32>, i32 -> vector<1x128xf32>
    %117 = arith.addf %115, %116 : vector<1x128xf32>
    %c64_i32_54 = arith.constant 64 : i32
    %118 = tpu.dynamic_rotate %117 by %c64_i32_54 dim 1 : vector<1x128xf32>, i32 -> vector<1x128xf32>
    %119 = arith.addf %117, %118 : vector<1x128xf32>
    %cst_55 = arith.constant 0.001953125 : f32
    %120 = vector.broadcast %cst_55 : f32 to vector<1x128xf32>
    %121 = arith.mulf %119, %120 : vector<1x128xf32>
    %c0_56 = arith.constant 0 : index
    %c0_57 = arith.constant 0 : index
    %122 = vector.load %arg5[%c0_56, %c0_57] : memref<1x128xf32, #tpu.memory_space<vmem>>, vector<1x128xf32>
    %cst_58 = arith.constant 9.99999974E-6 : f32
    %123 = vector.broadcast %cst_58 : f32 to vector<1x128xf32>
    %124 = arith.addf %121, %123 : vector<1x128xf32>
    %125 = math.rsqrt %124 : vector<1x128xf32>
    %126 = arith.mulf %122, %125 : vector<1x128xf32>
    %127 = vector.broadcast %126 : vector<1x128xf32> to vector<32x128xf32>
    %128 = arith.mulf %108, %127 : vector<32x128xf32>
    %c0_59 = arith.constant 0 : index
    %c0_60 = arith.constant 0 : index
    %129 = vector.load %arg6[%c0_59, %c0_60] : memref<1x128xf32, #tpu.memory_space<vmem>>, vector<1x128xf32>
    %130 = vector.broadcast %129 : vector<1x128xf32> to vector<32x128xf32>
    %131 = arith.addf %128, %130 : vector<32x128xf32>
    %132 = arith.addf %131, %0 : vector<32x128xf32>
    %cst_61 = arith.constant 0.000000e+00 : f32
    %133 = vector.broadcast %cst_61 : f32 to vector<32x128xf32>
    %134 = arith.maximumf %132, %133 : vector<32x128xf32>
    %c0_62 = arith.constant 0 : index
    %c0_63 = arith.constant 0 : index
    %135 = vector.load %arg7[%c0_62, %c0_63] : memref<32x128xf32, #tpu.memory_space<vmem>>, vector<32x128xf32>
    tpu.vector_store %arg7[%c0_62, %c0_63], %134 {strides = array<i32>} : memref<32x128xf32, #tpu.memory_space<vmem>>, vector<32x128xf32>,
    return
  }
}

</mosaic_0001>

<bundles_post_ra>
// kernel: tpu_custom_call.1
= control target key start
LH: loop header
LB: loop body
LE: loop exit
PB: predicated region body
PF: predicated region fallthrough
CT: control target
= control target key end

     0   :  { %12 = vsyncpa [#allocation3], 0  ;;  %s1097_s0 = inlined_call_operand.hbm [shape: f32[32,128], index: 0, kind: input, shape index: {}]   ;;  %s1098_s1 = inlined_call_operand.hbm [shape: f32[3,128,128], index: 1, kind: input, shape index: {}]   ;;  %s1099_s2 = inlined_call_operand.hbm [shape: f32[3,128,128], index: 2, kind: input, shape index: {}]   ;;  %s1100_s3 = inlined_call_operand.vmem [shape: f32[1,128], index: 3, kind: input, shape index: {}]   ;;  %s1101_s4 = inlined_call_operand.vmem [shape: f32[1,128], index: 4, kind: input, shape index: {}]   ;;  %s1102_s5 = inlined_call_operand.vmem [shape: f32[1,128], index: 5, kind: input, shape index: {}]   ;;  %s1103_s6 = inlined_call_operand.vmem [shape: f32[1,128], index: 6, kind: input, shape index: {}]   ;;  %s1104_s7 = inlined_call_operand.hbm [shape: f32[32,128], index: 7, kind: output, shape index: {}]  }
   0x1   :  { %13 = vsyncpa [#allocation6], 0 }
   0x2   :  { %14 = vsyncpa [#allocation4], 0  ;;  %s32_s26 = sshll.u32 %s1098_s1, 4  ;;  %s839_s27 = smov [#allocation5]   ;;  %s33_s26 = int_to_ptr.hbm [resolvable:$true] %s32_s26 }
   0x3   :  { %s34_s28 = sshll.u32 %s839_s27, 4  ;;  %s19_s8 = sshll.u32 %s1097_s0, 4  ;;  %s35_s28 = int_to_ptr.vmem [resolvable:$true] %s34_s28  ;;  %s20_s8 = int_to_ptr.hbm [resolvable:$true] %s19_s8 }
   0x4   :  { %s840_s9 = smov 128   ;;  %s841_s10 = smov 8  }
   0x5   :  { %40 = dma.hbm_to_vmem [thread:$0]  %s33_s26, 6144, %s35_s28, [#allocation6], %s840_s9, %s840_s9, %s841_s10  }
   0x6   :  { %s842_s11 = smov [#allocation2]   ;;  %s45_s1 = sshll.u32 %s1099_s2, 4  ;;  %s46_s1 = int_to_ptr.hbm [resolvable:$true] %s45_s1 }
   0x7   :  { %s21_s12 = sshll.u32 %s842_s11, 4  ;;  %s843_s0 = smov [#allocation7]   ;;  %s22_s12 = int_to_ptr.vmem [resolvable:$true] %s21_s12 }
   0x8   :  { %27 = dma.hbm_to_vmem [thread:$0]  %s20_s8, 512, %s22_s12, [#allocation3], %s840_s9, %s840_s9, %s841_s10  }
   0x9   :  { %s47_s15 = sshll.u32 %s843_s0, 4  ;;  %s48_s15 = int_to_ptr.vmem [resolvable:$true] %s47_s15 }
   0xa   :  { %53 = dma.hbm_to_vmem [thread:$0]  %s46_s1, 6144, %s48_s15, [#allocation6], %s840_s9, %s840_s9, %s841_s10  }
   0xb   :  { %833 = dma.done.wait [#allocation3], 512  }
   0xc   :  { %834 = vsyncadd [#allocation3], 4294966784 }
   0xd   :  { %835 = dma.done.wait [#allocation6], 12288  }
   0xe   :  { %836 = vsyncadd [#allocation6], 4294955008  ;;  %v288_v0 = vld [vmem:[#allocation5 + $0x178] sm:$0xff]  ;;  %v287_v1 = vld [vmem:[#allocation5 + $0x170] sm:$0xff]  ;;  %v78_v21 = vlaneseq  ;;  %v844_v55 = vmov 0.0   ;;  %s845_s2 = smov 16  }
   0xf   :  { %v213_v2 = vld [vmem:[#allocation5 + $0xf8] sm:$0xff]  ;;  %289 = vmatpush.msra.mxu2 %v288_v0  ;;  %v212_v4 = vld [vmem:[#allocation5 + $0xf0] sm:$0xff]  ;;  %v286_v5 = vld [vmem:[#allocation5 + $0x168] sm:$0xff]  ;;  %s846_s16 = smov 32   ;;  %s847_s17 = smov 64  }
  0x10   :  { %214 = vmatpush.msra.mxu0 %v213_v2  ;;  %v196_v3 = vld [vmem:[#allocation5 + $0x78] sm:$0xff]  ;;  %v195_v6 = vld [vmem:[#allocation5 + $0x70] sm:$0xff]  ;;  %v211_v7 = vld [vmem:[#allocation5 + $0xe8] sm:$0xff]  ;;  %v907_v28 = vshrl.u32 %v78_v21, 7  ;;  %s671_s26 = sshll.u32 %s1104_s7, 4  ;;  %s672_s26 = int_to_ptr.hbm [resolvable:$true] %s671_s26 }
  0x11   :  { %243 = vmatpush.msra.mxu1 %v196_v3  ;;  %290 = vmatpush.msra.mxu2 %v287_v1  ;;  %v194_v8 = vld [vmem:[#allocation5 + $0x68] sm:$0xff]  ;;  %v285_v9 = vld [vmem:[#allocation5 + $0x160] sm:$0xff]  ;;  %v284_v12 = vld [vmem:[#allocation5 + $0x158] sm:$0xff] }
  0x12   :  { %215 = vmatpush.msra.mxu0 %v212_v4  ;;  %v210_v10 = vld [vmem:[#allocation5 + $0xe0] sm:$0xff]  ;;  %v209_v13 = vld [vmem:[#allocation5 + $0xd8] sm:$0xff]  ;;  %v283_v15 = vld [vmem:[#allocation5 + $0x150] sm:$0xff]  ;;  %v87_v36 = vand.u32 15, %v907_v28  ;;  %v80_v46 = vadd.s32 8, %v907_v28  ;;  %vm159_vm1 = vcmp.lt.s32.totalorder %v907_v28, 1 }
  0x13   :  { %244 = vmatpush.msra.mxu1 %v195_v6  ;;  %291 = vmatpush.msra.mxu2 %v286_v5  ;;  %v193_v11 = vld [vmem:[#allocation5 + $0x60] sm:$0xff]  ;;  %v192_v14 = vld [vmem:[#allocation5 + $0x58] sm:$0xff]  ;;  %v208_v16 = vld [vmem:[#allocation5 + $0xd0] sm:$0xff]  ;;  %vm172_vm2 = vcmp.lt.s32.totalorder %v907_v28, 7  ;;  %v81_v3 = vadd.s32 16, %v907_v28 }
  0x14   :  { %216 = vmatpush.msra.mxu0 %v211_v7  ;;  %v191_v17 = vld [vmem:[#allocation5 + $0x50] sm:$0xff]  ;;  %v282_v18 = vld [vmem:[#allocation5 + $0x148] sm:$0xff]  ;;  %v281_v22 = vld [vmem:[#allocation5 + $0x140] sm:$0xff]  ;;  %vm131_vm0 = vcmp.ge.s32.totalorder %v87_v36, 1  ;;  %v94_v59 = vand.u32 15, %v80_v46 }
  0x15   :  { %245 = vmatpush.msra.mxu1 %v194_v8  ;;  %292 = vmatpush.msra.mxu2 %v285_v9  ;;  %v207_v19 = vld [vmem:[#allocation5 + $0xc8] sm:$0xff]  ;;  %v206_v23 = vld [vmem:[#allocation5 + $0xc0] sm:$0xff]  ;;  %v280_v25 = vld [vmem:[#allocation5 + $0x138] sm:$0xff]  ;;  %v923_v56 = vsel %vm131_vm0, 1.0, %v844_v55  ;;  %v101_v7 = vand.u32 15, %v81_v3 }
  0x16   :  { %217 = vmatpush.msra.mxu0 %v210_v10  ;;  %v190_v20 = vld [vmem:[#allocation5 + $0x48] sm:$0xff]  ;;  %v189_v24 = vld [vmem:[#allocation5 + $0x40] sm:$0xff]  ;;  %v205_v26 = vld [vmem:[#allocation5 + $0xb8] sm:$0xff]  ;;  %vm144_vm3 = vcmp.le.s32.totalorder %v94_v59, 14 }
  0x17   :  { %246 = vmatpush.msra.mxu1 %v193_v11  ;;  %293 = vmatpush.msra.mxu2 %v284_v12  ;;  %v188_v27 = vld [vmem:[#allocation5 + $0x38] sm:$0xff]  ;;  %v279_v29 = vld [vmem:[#allocation5 + $0x130] sm:$0xff]  ;;  %v278_v31 = vld [vmem:[#allocation5 + $0x128] sm:$0xff]  ;;  %v937_v4 = vsel %vm144_vm3, 1.0, %v844_v55  ;;  %v82_v11 = vadd.s32 24, %v907_v28  ;;  %vm133_vm4 = vcmp.ge.s32.totalorder %v101_v7, 1 }
  0x18   :  { %218 = vmatpush.msra.mxu0 %v209_v13  ;;  %v204_v30 = vld [vmem:[#allocation5 + $0xb0] sm:$0xff]  ;;  %v203_v33 = vld [vmem:[#allocation5 + $0xa8] sm:$0xff]  ;;  %v909_v35 = vld [vmem:[#allocation2 + $0x18] sm:$0xff]  ;;  %v949_v13 = vsel %vm133_vm4, 1.0, %v844_v55 }
  0x19   :  { %247 = vmatpush.msra.mxu1 %v192_v14  ;;  %294 = vmatpush.msra.mxu2 %v283_v15  ;;  %v187_v32 = vld [vmem:[#allocation5 + $0x30] sm:$0xff]  ;;  %v186_v34 = vld [vmem:[#allocation5 + $0x28] sm:$0xff]  ;;  %v277_v37 = vld [vmem:[#allocation5 + $0x120] sm:$0xff]  ;;  %v158_v45 = vrot.slane %v909_v35, 7  ;;  %v171_v12 = vrot.slane %v909_v35, 1  ;;  %v108_v15 = vand.u32 15, %v82_v11 }
  0x1a   :  { %219 = vmatpush.msra.mxu0 %v208_v16  ;;  %v202_v38 = vld [vmem:[#allocation5 + $0xa0] sm:$0xff]  ;;  %v276_v41 = vld [vmem:[#allocation5 + $0x118] sm:$0xff]  ;;  %v914_v43 = vld [vmem:[#allocation2 + $0x8] sm:$0xff] }
  0x1b   :  { %248 = vmatpush.msra.mxu1 %v191_v17  ;;  %295 = vmatpush.msra.mxu2 %v282_v18  ;;  %v185_v39 = vld [vmem:[#allocation5 + $0x20] sm:$0xff]  ;;  %v201_v42 = vld [vmem:[#allocation5 + $0x98] sm:$0xff]  ;;  %v275_v48 = vld [vmem:[#allocation5 + $0x110] sm:$0xff]  ;;  %v169_v52 = vrot.slane %v914_v43, 1  ;;  %v156_v6 = vrot.slane %v914_v43, 7  ;;  %vm146_vm5 = vcmp.le.s32.totalorder %v108_v15, 14 }
  0x1c   :  { %220 = vmatpush.msra.mxu0 %v207_v19  ;;  %v912_v40 = vld [vmem:[#allocation2] sm:$0xff]  ;;  %v184_v47 = vld [vmem:[#allocation5 + $0x18] sm:$0xff]  ;;  %v200_v49 = vld [vmem:[#allocation5 + $0x90] sm:$0xff]  ;;  %v957_v18 = vsel %vm146_vm5, 1.0, %v844_v55 }
  0x1d   :  { %249 = vmatpush.msra.mxu1 %v190_v20  ;;  %296 = vmatpush.msra.mxu2 %v281_v22  ;;  %v155_v44 = vrot.slane %v912_v40, 7  ;;  %v183_v50 = vld [vmem:[#allocation5 + $0x10] sm:$0xff]  ;;  %v168_v51 = vrot.slane %v912_v40, 1  ;;  %v274_v53 = vld [vmem:[#allocation5 + $0x108] sm:$0xff]  ;;  %v273_v61 = vld [vmem:[#allocation5 + $0x100] sm:$0xff] }
  0x1e   :  { %221 = vmatpush.msra.mxu0 %v206_v23  ;;  %v199_v54 = vld [vmem:[#allocation5 + $0x88] sm:$0xff]  ;;  %v929_v58 = vld [vmem:[#allocation2 + $0x10] sm:$0xff]  ;;  %v198_v62 = vld [vmem:[#allocation5 + $0x80] sm:$0xff] }
  0x1f   :  { %250 = vmatpush.msra.mxu1 %v189_v24  ;;  %297 = vmatpush.msra.mxu2 %v280_v25  ;;  %v163_v57 = vsel %vm159_vm1, %v158_v45, %v155_v44  ;;  %v182_v60 = vld [vmem:[#allocation5 + $0x8] sm:$0xff]  ;;  %v175_v63 = vsel %vm172_vm2, %v168_v51, %v169_v52  ;;  %v181_v0 = vld [vmem:[#allocation5] sm:$0xff]  ;;  %v170_v2 = vrot.slane %v929_v58, 1  ;;  %v162_v9 = vsel %vm159_vm1, %v155_v44, %v156_v6 }
  0x20   :  { %222 = vmatpush.msra.mxu0 %v205_v26  ;;  %v164_v1 = vmul.f32 %v923_v56, %v163_v57  ;;  %v157_v10 = vrot.slane %v929_v58, 7  ;;  %v176_v19 = vsel %vm172_vm2, %v171_v12, %v168_v51 }
  0x21   :  { %251 = vmatpush.msra.mxu1 %v188_v27  ;;  %298 = vmatpush.msra.mxu2 %v279_v29  ;;  %v174_v5 = vsel %vm172_vm2, %v169_v52, %v170_v2  ;;  %v173_v16 = vsel %vm172_vm2, %v170_v2, %v171_v12  ;;  %v180_v20 = vmul.f32 %v957_v18, %v176_v19 }
  0x22   :  { %223 = vmatpush.msra.mxu0 %v204_v30  ;;  %v178_v8 = vmul.f32 %v937_v4, %v174_v5  ;;  %v161_v14 = vsel %vm159_vm1, %v156_v6, %v157_v10  ;;  %v160_v21 = vsel %vm159_vm1, %v157_v10, %v158_v45 }
  0x23   :  { %252 = vmatpush.msra.mxu1 %v187_v32  ;;  %299 = vmatpush.msra.mxu2 %v278_v31  ;;  %v166_v17 = vmul.f32 %v949_v13, %v161_v14 }
  0x24   :  { %224 = vmatpush.msra.mxu0 %v203_v33 }
  0x25   :  { %253 = vmatpush.msra.mxu1 %v186_v34  ;;  %300 = vmatpush.msra.mxu2 %v277_v37 }
  0x26   :  { %225 = vmatpush.msra.mxu0 %v202_v38 }
  0x27   :  { %254 = vmatpush.msra.mxu1 %v185_v39  ;;  %301 = vmatpush.msra.mxu2 %v276_v41 }
  0x28   :  { %226 = vmatpush.msra.mxu0 %v201_v42 }
  0x29   :  { %255 = vmatpush.msra.mxu1 %v184_v47  ;;  %302 = vmatpush.msra.mxu2 %v275_v48 }
  0x2a   :  { %227 = vmatpush.msra.mxu0 %v200_v49 }
  0x2b   :  { %256 = vmatpush.msra.mxu1 %v183_v50  ;;  %303 = vmatpush.msra.mxu2 %v274_v53 }
  0x2c   :  { %228 = vmatpush.msra.mxu0 %v199_v54 }
  0x2d   :  { %257 = vmatpush.msra.mxu1 %v182_v60  ;;  %304 = vmatpush.msra.mxu2 %v273_v61 }
  0x2e   :  { %229 = vmatpush.msra.mxu0 %v198_v62  ;;  %305 = vmatmul.f32.vlgmr.msra.gmra.mxu2 %v175_v63 }
  0x2f   :  { %258 = vmatpush.msra.mxu1 %v181_v0  ;;  %230 = vmatmul.f32.vlgmr.msra.gmra.mxu0 %v912_v40 }
  0x30   :  { %259 = vmatmul.f32.vlgmr.msra.gmra.mxu1 %v164_v1 }
  0x36   :  { %308 = vmatmul.f32.gmra.mxu2 %v178_v8 }
  0x37   :  { %233 = vmatmul.f32.gmra.mxu0 %v914_v43 }
  0x38   :  { %262 = vmatmul.f32.gmra.mxu1 %v162_v9 }
  0x3e   :  { %311 = vmatmul.f32.gmra.mxu2 %v173_v16 }
  0x3f   :  { %236 = vmatmul.f32.gmra.mxu0 %v929_v58 }
  0x40   :  { %265 = vmatmul.f32.gmra.mxu1 %v166_v17 }
  0x46   :  { %314 = vmatmul.f32.gmra.mxu2 %v180_v20 }
  0x47   :  { %239 = vmatmul.f32.gmra.mxu0 %v909_v35 }
  0x48   :  { %268 = vmatmul.f32.gmra.mxu1 %v160_v21 }
  0xac   :  { %v231_v22 = vpop.f32.mrf.mxu0 }
  0xad   :  { %v260_v23 = vpop.f32.mrf.mxu1 }
  0xae   :  { %v261_v33 = vadd.f32 %v260_v23, %v231_v22 }
  0xb1   :  { %v306_v24 = vpop.f32.mrf.mxu2 }
  0xb2   :  { %v318_v39 = vadd.f32 %v306_v24, %v261_v33  ;;  %v461_v33 = vld [vmem:[#allocation7 + $0xe8] sm:$0xff] }
  0xb4   :  { %v234_v25 = vpop.f32.mrf.mxu0 }
  0xb5   :  { %v263_v26 = vpop.f32.mrf.mxu1 }
  0xb6   :  { %v264_v31 = vadd.f32 %v263_v26, %v234_v25 }
  0xb9   :  { %v309_v27 = vpop.f32.mrf.mxu2 }
  0xba   :  { %v319_v36 = vadd.f32 %v309_v27, %v264_v31  ;;  %v462_v31 = vld [vmem:[#allocation7 + $0xf0] sm:$0xff] }
  0xbc   :  { %v237_v29 = vpop.f32.mrf.mxu0  ;;  %v322_v44 = vadd.f32 %v319_v36, %v318_v39 }
  0xbd   :  { %v266_v30 = vpop.f32.mrf.mxu1 }
  0xbe   :  { %v267_v34 = vadd.f32 %v266_v30, %v237_v29  ;;  %v463_v30 = vld [vmem:[#allocation7 + $0xf8] sm:$0xff] }
  0xbf   :  { %464 = vmatpush.msra.mxu3 %v463_v30 }
  0xc1   :  { %v312_v32 = vpop.f32.mrf.mxu2  ;;  %465 = vmatpush.msra.mxu3 %v462_v31 }
  0xc2   :  { %v320_v41 = vadd.f32 %v312_v32, %v267_v34  ;;  %v994_v32 = vld [vmem:[#allocation7 + $0x178] sm:$0xff] }
  0xc3   :  { %539 = vmatpush.msrb.mxu1 %v994_v32  ;;  %466 = vmatpush.msra.mxu3 %v461_v33  ;;  %v446_v34 = vld [vmem:[#allocation7 + $0x78] sm:$0xff] }
  0xc4   :  { %v240_v37 = vpop.f32.mrf.mxu0  ;;  %v323_v46 = vadd.f32 %v322_v44, %v320_v41  ;;  %493 = vmatpush.msrb.mxu0 %v446_v34  ;;  %689 = vmatpush.msrb.mxu2 %v446_v34  ;;  %v1003_v44 = vld [vmem:[#allocation7 + $0x160] sm:$0xff] }
  0xc5   :  { %v269_v38 = vpop.f32.mrf.mxu1 }
  0xc6   :  { %v270_v42 = vadd.f32 %v269_v38, %v240_v37  ;;  %v460_v37 = vld [vmem:[#allocation7 + $0xe0] sm:$0xff]  ;;  %v445_v38 = vld [vmem:[#allocation7 + $0x70] sm:$0xff] }
  0xc7   :  { %467 = vmatpush.msra.mxu3 %v460_v37  ;;  %494 = vmatpush.msrb.mxu0 %v445_v38  ;;  %v375_v37 = vld [vmem:[%s1100_s3] sm:$0x1] }
  0xc8   :  { %690 = vmatpush.msrb.mxu2 %v445_v38 }
  0xc9   :  { %v315_v45 = vpop.f32.mrf.mxu2 }
  0xca   :  { %v321_v47 = vadd.f32 %v315_v45, %v270_v42  ;;  %v444_v42 = vld [vmem:[#allocation7 + $0x68] sm:$0xff]  ;;  %v458_v45 = vld [vmem:[#allocation7 + $0xd0] sm:$0xff] }
  0xcb   :  { %495 = vmatpush.msrb.mxu0 %v444_v42  ;;  %691 = vmatpush.msrb.mxu2 %v444_v42 }
  0xcc   :  { %v324_v48 = vadd.f32 %v323_v46, %v321_v47  ;;  %v443_v46 = vld [vmem:[#allocation7 + $0x60] sm:$0xff] }
  0xcd   :  { %496 = vmatpush.msrb.mxu0 %v443_v46  ;;  %692 = vmatpush.msrb.mxu2 %v443_v46 }
  0xce   :  { %v325_v49 = vrot.slane %v324_v48, 4 }
  0xd0   :  { %v326_v50 = vadd.f32 %v325_v49, %v324_v48  ;;  %v457_v48 = vld [vmem:[#allocation7 + $0xc8] sm:$0xff]  ;;  %v442_v49 = vld [vmem:[#allocation7 + $0x58] sm:$0xff] }
  0xd1   :  { %497 = vmatpush.msrb.mxu0 %v442_v49  ;;  %693 = vmatpush.msrb.mxu2 %v442_v49 }
  0xd2   :  { %v327_v51 = vrot.slane %v326_v50, 2 }
  0xd4   :  { %v328_v52 = vadd.f32 %v327_v51, %v326_v50  ;;  %v1009_v50 = vld [vmem:[#allocation7 + $0x150] sm:$0xff]  ;;  %v456_v51 = vld [vmem:[#allocation7 + $0xc0] sm:$0xff] }
  0xd6   :  { %v329_v53 = vrot.slane %v328_v52, 1 }
  0xd8   :  { %v330_v54 = vadd.f32 %v329_v53, %v328_v52  ;;  %v441_v52 = vld [vmem:[#allocation7 + $0x50] sm:$0xff]  ;;  %v1012_v53 = vld [vmem:[#allocation7 + $0x148] sm:$0xff] }
  0xd9   :  { %498 = vmatpush.msrb.mxu0 %v441_v52  ;;  %694 = vmatpush.msrb.mxu2 %v441_v52 }
  0xda   :  { %331 = vrot.lane.b32.xlu0 %v330_v54, %s841_s10 }
 0x14c   :  { %v332_v55 = vpop.permute.xlu0 %331 }
 0x14d   :  { %v333_v57 = vadd.f32 %v332_v55, %v330_v54  ;;  %v455_v54 = vld [vmem:[#allocation7 + $0xb8] sm:$0xff]  ;;  %v440_v55 = vld [vmem:[#allocation7 + $0x48] sm:$0xff] }
 0x14e   :  { %499 = vmatpush.msrb.mxu0 %v440_v55  ;;  %695 = vmatpush.msrb.mxu2 %v440_v55 }
 0x14f   :  { %334 = vrot.lane.b32.xlu0 %v333_v57, %s845_s2 }
 0x1c1   :  { %v335_v59 = vpop.permute.xlu0 %334 }
 0x1c2   :  { %v336_v60 = vadd.f32 %v335_v59, %v333_v57  ;;  %v1015_v57 = vld [vmem:[#allocation7 + $0x140] sm:$0xff]  ;;  %v454_v59 = vld [vmem:[#allocation7 + $0xb0] sm:$0xff] }
 0x1c4   :  { %337 = vrot.lane.b32.xlu1 %v336_v60, %s846_s16 }
 0x236   :  { %v338_v61 = vpop.permute.xlu1 %337 }
 0x237   :  { %v339_v62 = vadd.f32 %v338_v61, %v336_v60  ;;  %v439_v60 = vld [vmem:[#allocation7 + $0x40] sm:$0xff]  ;;  %v1018_v61 = vld [vmem:[#allocation7 + $0x138] sm:$0xff] }
 0x238   :  { %500 = vmatpush.msrb.mxu0 %v439_v60  ;;  %696 = vmatpush.msrb.mxu2 %v439_v60 }
 0x239   :  { %340 = vrot.lane.b32.xlu1 %v339_v62, %s847_s17 }
 0x2ab   :  { %v341_v63 = vpop.permute.xlu1 %340 }
 0x2ac   :  { %v342_v0 = vadd.f32 %v341_v63, %v339_v62  ;;  %v453_v62 = vld [vmem:[#allocation7 + $0xa8] sm:$0xff]  ;;  %v438_v63 = vld [vmem:[#allocation7 + $0x38] sm:$0xff] }
 0x2ad   :  { %501 = vmatpush.msrb.mxu0 %v438_v63  ;;  %697 = vmatpush.msrb.mxu2 %v438_v63 }
 0x2ae   :  { %v343_v1 = vmul.f32 0.001953125, %v342_v0  ;;  %v1021_v0 = vld [vmem:[#allocation7 + $0x130] sm:$0xff] }
 0x2b0   :  { %v344_v2 = vperm.slane %v343_v1, 0  ;;  %v452_v1 = vld [vmem:[#allocation7 + $0xa0] sm:$0xff] }
 0x2b2   :  { %v971_v3 = vsub.f32 %v318_v39, %v344_v2  ;;  %v973_v5 = vsub.f32 %v319_v36, %v344_v2  ;;  %v975_v6 = vsub.f32 %v320_v41, %v344_v2  ;;  %v977_v7 = vsub.f32 %v321_v47, %v344_v2  ;;  %v997_v36 = vld [vmem:[#allocation7 + $0x170] sm:$0xff]  ;;  %v1000_v39 = vld [vmem:[#allocation7 + $0x168] sm:$0xff]  ;;  %v459_v41 = vld [vmem:[#allocation7 + $0xd8] sm:$0xff] }
 0x2b3   :  { %540 = vmatpush.msrb.mxu1 %v997_v36  ;;  %468 = vmatpush.msra.mxu3 %v459_v41  ;;  %v1006_v47 = vld [vmem:[#allocation7 + $0x158] sm:$0xff]  ;;  %v437_v2 = vld [vmem:[#allocation7 + $0x30] sm:$0xff] }
 0x2b4   :  { %v349_v8 = vmul.f32 %v971_v3, %v971_v3  ;;  %v350_v9 = vmul.f32 %v973_v5, %v973_v5  ;;  %v351_v10 = vmul.f32 %v975_v6, %v975_v6  ;;  %v352_v12 = vmul.f32 %v977_v7, %v977_v7  ;;  %502 = vmatpush.msrb.mxu0 %v437_v2 }
 0x2b5   :  { %541 = vmatpush.msrb.mxu1 %v1000_v39  ;;  %469 = vmatpush.msra.mxu3 %v458_v45 }
 0x2b6   :  { %v353_v11 = vadd.f32 %v350_v9, %v349_v8  ;;  %v1024_v8 = vld [vmem:[#allocation7 + $0x128] sm:$0xff]  ;;  %698 = vmatpush.msrb.mxu2 %v437_v2  ;;  %v451_v9 = vld [vmem:[#allocation7 + $0x98] sm:$0xff] }
 0x2b7   :  { %542 = vmatpush.msrb.mxu1 %v1003_v44  ;;  %470 = vmatpush.msra.mxu3 %v457_v48 }
 0x2b8   :  { %v354_v14 = vadd.f32 %v353_v11, %v351_v10  ;;  %v436_v10 = vld [vmem:[#allocation7 + $0x28] sm:$0xff]  ;;  %v1026_v11 = vld [vmem:[#allocation7 + $0x120] sm:$0xff] }
 0x2b9   :  { %543 = vmatpush.msrb.mxu1 %v1006_v47  ;;  %471 = vmatpush.msra.mxu3 %v456_v51 }
 0x2ba   :  { %v355_v15 = vadd.f32 %v354_v14, %v352_v12  ;;  %v450_v12 = vld [vmem:[#allocation7 + $0x90] sm:$0xff]  ;;  %v435_v14 = vld [vmem:[#allocation7 + $0x20] sm:$0xff]  ;;  %503 = vmatpush.msrb.mxu0 %v436_v10  ;;  %699 = vmatpush.msrb.mxu2 %v436_v10 }
 0x2bb   :  { %544 = vmatpush.msrb.mxu1 %v1009_v50  ;;  %472 = vmatpush.msra.mxu3 %v455_v54 }
 0x2bc   :  { %v356_v16 = vrot.slane %v355_v15, 4  ;;  %504 = vmatpush.msrb.mxu0 %v435_v14  ;;  %700 = vmatpush.msrb.mxu2 %v435_v14 }
 0x2bd   :  { %545 = vmatpush.msrb.mxu1 %v1012_v53  ;;  %473 = vmatpush.msra.mxu3 %v454_v59 }
 0x2be   :  { %v357_v17 = vadd.f32 %v356_v16, %v355_v15  ;;  %v526_v15 = vld [vmem:[#allocation7 + $0x118] sm:$0xff]  ;;  %v449_v16 = vld [vmem:[#allocation7 + $0x88] sm:$0xff] }
 0x2bf   :  { %546 = vmatpush.msrb.mxu1 %v1015_v57  ;;  %474 = vmatpush.msra.mxu3 %v453_v62 }
 0x2c0   :  { %v358_v19 = vrot.slane %v357_v17, 2 }
 0x2c1   :  { %547 = vmatpush.msrb.mxu1 %v1018_v61  ;;  %475 = vmatpush.msra.mxu3 %v452_v1 }
 0x2c2   :  { %v359_v20 = vadd.f32 %v358_v19, %v357_v17  ;;  %v434_v17 = vld [vmem:[#allocation7 + $0x18] sm:$0xff]  ;;  %v525_v19 = vld [vmem:[#allocation7 + $0x110] sm:$0xff] }
 0x2c3   :  { %548 = vmatpush.msrb.mxu1 %v1021_v0  ;;  %476 = vmatpush.msra.mxu3 %v451_v9 }
 0x2c4   :  { %v360_v21 = vrot.slane %v359_v20, 1  ;;  %505 = vmatpush.msrb.mxu0 %v434_v17  ;;  %701 = vmatpush.msrb.mxu2 %v434_v17 }
 0x2c5   :  { %549 = vmatpush.msrb.mxu1 %v1024_v8  ;;  %477 = vmatpush.msra.mxu3 %v450_v12 }
 0x2c6   :  { %v361_v22 = vadd.f32 %v360_v21, %v359_v20  ;;  %v448_v20 = vld [vmem:[#allocation7 + $0x80] sm:$0xff] }
 0x2c7   :  { %550 = vmatpush.msrb.mxu1 %v1026_v11  ;;  %478 = vmatpush.msra.mxu3 %v449_v16 }
 0x2c8   :  { %362 = vrot.lane.b32.xlu2 %v361_v22, %s841_s10 }
 0x2c9   :  { %551 = vmatpush.msrb.mxu1 %v526_v15  ;;  %479 = vmatpush.msra.mxu3 %v448_v20 }
 0x2cb   :  { %552 = vmatpush.msrb.mxu1 %v525_v19  ;;  %705 = vmatpush.msrb.mxu3 %v994_v32 }
 0x2cd   :  { %706 = vmatpush.msrb.mxu3 %v997_v36 }
 0x2cf   :  { %707 = vmatpush.msrb.mxu3 %v1000_v39 }
 0x2d1   :  { %708 = vmatpush.msrb.mxu3 %v1003_v44  ;;  %v731_v44 = vld [vmem:[%s1101_s4] ss:$0 sm:$0xff] }
 0x2d3   :  { %709 = vmatpush.msrb.mxu3 %v1006_v47 }
 0x2d5   :  { %710 = vmatpush.msrb.mxu3 %v1009_v50 }
 0x2d7   :  { %711 = vmatpush.msrb.mxu3 %v1012_v53 }
 0x2d9   :  { %712 = vmatpush.msrb.mxu3 %v1015_v57 }
 0x2db   :  { %713 = vmatpush.msrb.mxu3 %v1018_v61 }
 0x2dd   :  { %714 = vmatpush.msrb.mxu3 %v1021_v0 }
 0x2df   :  { %715 = vmatpush.msrb.mxu3 %v1024_v8 }
 0x2e1   :  { %716 = vmatpush.msrb.mxu3 %v1026_v11 }
 0x2e3   :  { %717 = vmatpush.msrb.mxu3 %v526_v15 }
 0x2e5   :  { %718 = vmatpush.msrb.mxu3 %v525_v19 }
 0x322   :  { %v363_v23 = vpop.permute.xlu2 %362 }
 0x323   :  { %v364_v24 = vadd.f32 %v363_v23, %v361_v22  ;;  %v433_v23 = vld [vmem:[#allocation7 + $0x10] sm:$0xff] }
 0x324   :  { %506 = vmatpush.msrb.mxu0 %v433_v23  ;;  %702 = vmatpush.msrb.mxu2 %v433_v23 }
 0x325   :  { %365 = vrot.lane.b32.xlu2 %v364_v24, %s845_s2 }
 0x37f   :  { %v366_v25 = vpop.permute.xlu2 %365 }
 0x380   :  { %v367_v26 = vadd.f32 %v366_v25, %v364_v24  ;;  %v524_v24 = vld [vmem:[#allocation7 + $0x108] sm:$0xff] }
 0x381   :  { %553 = vmatpush.msrb.mxu1 %v524_v24  ;;  %719 = vmatpush.msrb.mxu3 %v524_v24 }
 0x382   :  { %368 = vrot.lane.b32.xlu0 %v367_v26, %s846_s16 }
 0x3f4   :  { %v369_v27 = vpop.permute.xlu0 %368 }
 0x3f5   :  { %v990_v29 = vadd.f32 %v369_v27, %v367_v26  ;;  %v432_v26 = vld [vmem:[#allocation7 + $0x8] sm:$0xff]  ;;  %v523_v27 = vld [vmem:[#allocation7 + $0x100] sm:$0xff] }
 0x3f6   :  { %507 = vmatpush.msrb.mxu0 %v432_v26  ;;  %703 = vmatpush.msrb.mxu2 %v432_v26 }
 0x3f7   :  { %371 = vrot.lane.b32.xlu1 %v990_v29, %s847_s17  ;;  %554 = vmatpush.msrb.mxu1 %v523_v27 }
 0x3f8   :  { %720 = vmatpush.msrb.mxu3 %v523_v27 }
 0x469   :  { %v372_v21 = vpop.permute.xlu1 %371 }
 0x46a   :  { %v373_v22 = vadd.f32 %v372_v21, %v990_v29  ;;  %v431_v29 = vld [vmem:[#allocation7] sm:$0xff] }
 0x46b   :  { %508 = vmatpush.msrb.mxu0 %v431_v29  ;;  %704 = vmatpush.msrb.mxu2 %v431_v29 }
 0x46c   :  { %v374_v25 = vmul.f32 0.001953125, %v373_v22 }
 0x46e   :  { %v376_v30 = vadd.f32 1e-05, %v374_v25 }
 0x470   :  { %733 = vrsqrt.f32 %v376_v30  ;;  %vm383_vm7 = vweird.f32 %v376_v30 }
 0x476   :  { %v734_v31 = vpop.eup %733 }
 0x477   :  { %v378_v33 = vmul.f32 %v734_v31, %v376_v30  ;;  %vm384_vm6 = vweird.f32 %v734_v31 }
 0x478   :  { %vm385_vm8 = vmor %vm383_vm7, %vm384_vm6 }
 0x479   :  { %v379_v32 = vmul.f32 %v734_v31, %v378_v33 }
 0x47b   :  { %v380_v34 = vmul.f32 0.5, %v379_v32 }
 0x47d   :  { %v381_v36 = vsub.f32 1.5, %v380_v34 }
 0x47f   :  { %v382_v38 = vmul.f32 %v734_v31, %v381_v36 }
 0x481   :  { %v386_v39 = vsel %vm385_vm8, %v734_v31, %v382_v38 }
 0x482   :  { %v387_v41 = vmul.f32 %v386_v39, %v375_v37 }
 0x484   :  { %v389_v42 = vperm.slane %v387_v41, 0 }
 0x486   :  { %v391_v45 = vmul.f32 %v389_v42, %v971_v3  ;;  %v392_v46 = vmul.f32 %v389_v42, %v973_v5  ;;  %v394_v47 = vmul.f32 %v389_v42, %v977_v7  ;;  %v393_v48 = vmul.f32 %v389_v42, %v975_v6 }
 0x488   :  { %v399_v49 = vadd.f32 %v731_v44, %v391_v45  ;;  %v400_v50 = vadd.f32 %v731_v44, %v392_v46  ;;  %v402_v51 = vadd.f32 %v731_v44, %v394_v47  ;;  %v401_v52 = vadd.f32 %v731_v44, %v393_v48 }
 0x48a   :  { %v403_v53 = vmax.f32 %v399_v49, 0.0  ;;  %v404_v54 = vmax.f32 %v400_v50, 0.0  ;;  %v406_v55 = vmax.f32 %v402_v51, 0.0  ;;  %v405_v57 = vmax.f32 %v401_v52, 0.0 }
 0x48c   :  { %v407_v59 = vrot.slane %v403_v53, 7  ;;  %480 = vmatmul.f32.vlgmr.msra.gmra.mxu3 %v403_v53  ;;  %v419_v3 = vrot.slane %v403_v53, 1  ;;  %v420_v60 = vrot.slane %v404_v54, 1  ;;  %v410_v5 = vrot.slane %v406_v55, 7 }
 0x48d   :  { %v408_v61 = vrot.slane %v404_v54, 7  ;;  %v409_v7 = vrot.slane %v405_v57, 7  ;;  %v421_v63 = vrot.slane %v405_v57, 1 }
 0x48e   :  { %v425_v6 = vsel %vm172_vm2, %v419_v3, %v420_v60  ;;  %v414_v62 = vsel %vm159_vm1, %v410_v5, %v407_v59 }
 0x48f   :  { %555 = vmatmul.f32.vlgmr.msrb.gmra.mxu1 %v425_v6  ;;  %v415_v0 = vmul.f32 %v923_v56, %v414_v62  ;;  %v412_v1 = vsel %vm159_vm1, %v408_v61, %v409_v7  ;;  %v424_v8 = vsel %vm172_vm2, %v420_v60, %v421_v63  ;;  %v413_v10 = vsel %vm159_vm1, %v407_v59, %v408_v61 }
 0x490   :  { %v417_v2 = vmul.f32 %v949_v13, %v412_v1  ;;  %v428_v9 = vmul.f32 %v937_v4, %v424_v8  ;;  %v411_v56 = vsel %vm159_vm1, %v409_v7, %v410_v5  ;;  %v422_v13 = vrot.slane %v406_v55, 1 }
 0x491   :  { %509 = vmatmul.f32.vlgmr.msrb.gmra.mxu0 %v415_v0 }
 0x492   :  { %515 = vmatmul.f32.vlgmr.msrb.gmra.mxu2 %v417_v2  ;;  %v423_v11 = vsel %vm172_vm2, %v421_v63, %v422_v13  ;;  %v426_v12 = vsel %vm172_vm2, %v422_v13, %v419_v3 }
 0x493   :  { %v430_v4 = vmul.f32 %v957_v18, %v426_v12 }
 0x494   :  { %483 = vmatmul.f32.gmra.mxu3 %v404_v54 }
 0x497   :  { %558 = vmatmul.f32.gmra.mxu1 %v428_v9 }
 0x499   :  { %512 = vmatmul.f32.gmra.mxu0 %v413_v10 }
 0x49a   :  { %518 = vmatmul.f32.gmra.mxu2 %v411_v56 }
 0x49c   :  { %486 = vmatmul.f32.gmra.mxu3 %v405_v57 }
 0x4a4   :  { %489 = vmatmul.f32.gmra.mxu3 %v406_v55 }
 0x4ac   :  { %561 = vmatmul.f32.vlgmr.msrb.gmra.mxu3 %v423_v11 }
 0x4b4   :  { %564 = vmatmul.f32.gmra.mxu3 %v430_v4 }
 0x50c   :  { %v556_v19 = vpop.f32.mrf.mxu1 }
 0x50e   :  { %v510_v17 = vpop.f32.mrf.mxu0 }
 0x50f   :  { %v481_v14 = vpop.f32.mrf.mxu3 }
 0x510   :  { %v511_v25 = vadd.f32 %v510_v17, %v481_v14 }
 0x512   :  { %v568_v29 = vadd.f32 %v556_v19, %v511_v25 }
 0x514   :  { %v559_v26 = vpop.f32.mrf.mxu1 }
 0x515   :  { %v516_v21 = vpop.f32.mrf.mxu2 }
 0x516   :  { %v513_v22 = vpop.f32.mrf.mxu0 }
 0x517   :  { %v484_v15 = vpop.f32.mrf.mxu3 }
 0x518   :  { %v514_v23 = vadd.f32 %v513_v22, %v484_v15 }
 0x51a   :  { %v569_v27 = vadd.f32 %v559_v26, %v514_v23  ;;  %v625_v26 = vld [vmem:[%s1102_s5] sm:$0x1]  ;;  %s848_s5 = smov [#allocation8]  }
 0x51c   :  { %v572_v18 = vadd.f32 %v569_v27, %v568_v29 }
 0x51d   :  { %v519_v31 = vpop.f32.mrf.mxu2 }
 0x51f   :  { %v487_v16 = vpop.f32.mrf.mxu3 }
 0x520   :  { %v517_v30 = vadd.f32 %v516_v21, %v487_v16 }
 0x527   :  { %v490_v20 = vpop.f32.mrf.mxu3 }
 0x528   :  { %v520_v33 = vadd.f32 %v519_v31, %v490_v20  ;;  %v732_v31 = vld [vmem:[%s1103_s6] ss:$0 sm:$0xff]  ;;  %s669_s6 = sshll.u32 %s848_s5, 4  ;;  %s670_s6 = int_to_ptr.vmem [resolvable:$true] %s669_s6 }
 0x52f   :  { %v562_v24 = vpop.f32.mrf.mxu3 }
 0x530   :  { %v570_v28 = vadd.f32 %v562_v24, %v517_v30 }
 0x532   :  { %v573_v34 = vadd.f32 %v572_v18, %v570_v28 }
 0x537   :  { %v565_v32 = vpop.f32.mrf.mxu3 }
 0x538   :  { %v571_v36 = vadd.f32 %v565_v32, %v520_v33 }
 0x53a   :  { %v574_v37 = vadd.f32 %v573_v34, %v571_v36 }
 0x53c   :  { %v575_v38 = vrot.slane %v574_v37, 4 }
 0x53e   :  { %v576_v39 = vadd.f32 %v575_v38, %v574_v37 }
 0x540   :  { %v577_v41 = vrot.slane %v576_v39, 2 }
 0x542   :  { %v578_v42 = vadd.f32 %v577_v41, %v576_v39 }
 0x544   :  { %v579_v44 = vrot.slane %v578_v42, 1 }
 0x546   :  { %v580_v45 = vadd.f32 %v579_v44, %v578_v42 }
 0x548   :  { %581 = vrot.lane.b32.xlu2 %v580_v45, %s841_s10 }
 0x5a2   :  { %v582_v46 = vpop.permute.xlu2 %581 }
 0x5a3   :  { %v583_v47 = vadd.f32 %v582_v46, %v580_v45 }
 0x5a5   :  { %584 = vrot.lane.b32.xlu0 %v583_v47, %s845_s2 }
 0x617   :  { %v585_v48 = vpop.permute.xlu0 %584 }
 0x618   :  { %v586_v49 = vadd.f32 %v585_v48, %v583_v47 }
 0x61a   :  { %587 = vrot.lane.b32.xlu1 %v586_v49, %s846_s16 }
 0x68c   :  { %v588_v50 = vpop.permute.xlu1 %587 }
 0x68d   :  { %v589_v51 = vadd.f32 %v588_v50, %v586_v49 }
 0x68f   :  { %590 = vrot.lane.b32.xlu2 %v589_v51, %s847_s17 }
 0x6e9   :  { %v591_v52 = vpop.permute.xlu2 %590 }
 0x6ea   :  { %v592_v53 = vadd.f32 %v591_v52, %v589_v51 }
 0x6ec   :  { %v593_v54 = vmul.f32 0.001953125, %v592_v53 }
 0x6ee   :  { %v594_v55 = vperm.slane %v593_v54, 0 }
 0x6f0   :  { %v595_v57 = vsub.f32 %v568_v29, %v594_v55  ;;  %v596_v59 = vsub.f32 %v569_v27, %v594_v55  ;;  %v597_v3 = vsub.f32 %v570_v28, %v594_v55  ;;  %v598_v60 = vsub.f32 %v571_v36, %v594_v55 }
 0x6f2   :  { %v599_v5 = vmul.f32 %v595_v57, %v595_v57  ;;  %v600_v61 = vmul.f32 %v596_v59, %v596_v59  ;;  %v601_v7 = vmul.f32 %v597_v3, %v597_v3  ;;  %v602_v62 = vmul.f32 %v598_v60, %v598_v60 }
 0x6f4   :  { %v603_v6 = vadd.f32 %v600_v61, %v599_v5 }
 0x6f6   :  { %v604_v63 = vadd.f32 %v603_v6, %v601_v7 }
 0x6f8   :  { %v605_v0 = vadd.f32 %v604_v63, %v602_v62 }
 0x6fa   :  { %v606_v1 = vrot.slane %v605_v0, 4 }
 0x6fc   :  { %v607_v2 = vadd.f32 %v606_v1, %v605_v0 }
 0x6fe   :  { %v608_v8 = vrot.slane %v607_v2, 2 }
 0x700   :  { %v609_v9 = vadd.f32 %v608_v8, %v607_v2 }
 0x702   :  { %v610_v10 = vrot.slane %v609_v9, 1 }
 0x704   :  { %v611_v56 = vadd.f32 %v610_v10, %v609_v9 }
 0x706   :  { %612 = vrot.lane.b32.xlu0 %v611_v56, %s841_s10 }
 0x778   :  { %v613_v13 = vpop.permute.xlu0 %612 }
 0x779   :  { %v614_v11 = vadd.f32 %v613_v13, %v611_v56 }
 0x77b   :  { %615 = vrot.lane.b32.xlu1 %v614_v11, %s845_s2 }
 0x7ed   :  { %v616_v12 = vpop.permute.xlu1 %615 }
 0x7ee   :  { %v617_v4 = vadd.f32 %v616_v12, %v614_v11 }
 0x7f0   :  { %618 = vrot.lane.b32.xlu2 %v617_v4, %s846_s16 }
 0x84a   :  { %v619_v14 = vpop.permute.xlu2 %618 }
 0x84b   :  { %v620_v15 = vadd.f32 %v619_v14, %v617_v4 }
 0x84d   :  { %621 = vrot.lane.b32.xlu0 %v620_v15, %s847_s17 }
 0x8bf   :  { %v622_v16 = vpop.permute.xlu0 %621 }
 0x8c0   :  { %v623_v17 = vadd.f32 %v622_v16, %v620_v15 }
 0x8c2   :  { %v624_v19 = vmul.f32 0.001953125, %v623_v17 }
 0x8c4   :  { %v626_v20 = vadd.f32 1e-05, %v624_v19 }
 0x8c6   :  { %735 = vrsqrt.f32 %v626_v20  ;;  %vm633_vm10 = vweird.f32 %v626_v20 }
 0x8cc   :  { %v736_v21 = vpop.eup %735 }
 0x8cd   :  { %v628_v22 = vmul.f32 %v736_v21, %v626_v20  ;;  %vm634_vm9 = vweird.f32 %v736_v21 }
 0x8ce   :  { %vm635_vm11 = vmor %vm633_vm10, %vm634_vm9 }
 0x8cf   :  { %v629_v23 = vmul.f32 %v736_v21, %v628_v22 }
 0x8d1   :  { %v630_v24 = vmul.f32 0.5, %v629_v23 }
 0x8d3   :  { %v631_v25 = vsub.f32 1.5, %v630_v24 }
 0x8d5   :  { %v632_v27 = vmul.f32 %v736_v21, %v631_v25 }
 0x8d7   :  { %v636_v30 = vsel %vm635_vm11, %v736_v21, %v632_v27 }
 0x8d8   :  { %v637_v29 = vmul.f32 %v636_v30, %v625_v26 }
 0x8da   :  { %v639_v28 = vperm.slane %v637_v29, 0 }
 0x8dc   :  { %v641_v33 = vmul.f32 %v639_v28, %v595_v57  ;;  %v642_v18 = vmul.f32 %v639_v28, %v596_v59  ;;  %v643_v32 = vmul.f32 %v639_v28, %v597_v3  ;;  %v644_v34 = vmul.f32 %v639_v28, %v598_v60 }
 0x8de   :  { %v649_v36 = vadd.f32 %v732_v31, %v641_v33  ;;  %v650_v37 = vadd.f32 %v732_v31, %v642_v18  ;;  %v651_v38 = vadd.f32 %v732_v31, %v643_v32  ;;  %v652_v39 = vadd.f32 %v732_v31, %v644_v34 }
 0x8e0   :  { %v653_v41 = vadd.f32 %v649_v36, %v912_v40  ;;  %v654_v42 = vadd.f32 %v650_v37, %v914_v43  ;;  %v655_v44 = vadd.f32 %v651_v38, %v929_v58  ;;  %v656_v45 = vadd.f32 %v652_v39, %v909_v35 }
 0x8e2   :  { %v657_v46 = vmax.f32 %v653_v41, 0.0  ;;  %v658_v47 = vmax.f32 %v654_v42, 0.0  ;;  %v659_v48 = vmax.f32 %v655_v44, 0.0  ;;  %v660_v49 = vmax.f32 %v656_v45, 0.0 }
 0x8e4   :  { %661 = vst [vmem:[#allocation8] sm:$0xff] %v657_v46 }
 0x8e5   :  { %662 = vst [vmem:[#allocation8 + $0x8] sm:$0xff] %v658_v47 }
 0x8e6   :  { %663 = vst [vmem:[#allocation8 + $0x10] sm:$0xff] %v659_v48 }
 0x8e7   :  { %664 = vst [vmem:[#allocation8 + $0x18] sm:$0xff] %v660_v49 }
 0x8e8   :  { %677 = dma.vmem_to_hbm [thread:$0]  %s670_s6, 512, %s672_s26, [#allocation4], %s840_s9, %s840_s9, %s841_s10  }
 0x8e9   :  { %837 = dma.done.wait [#allocation4], 512  }
 0x8ea   :  { %838 = vsyncadd [#allocation4], 4294966784 }
 0x8eb   :  { %682 = vsyncpa [#allocation3], 1 }
 0x8ec   :  { %683 = vsyncpa [#allocation6], 1 }
 0x8ed   :  { %684 = vsyncpa [#allocation4], 1 }

</bundles_post_ra>
